<compile_context>
chip_gen: v5e
topology: v5e:2x2
jax: 0.10.0
libtpu: 0.0.40
codegen_flags: <defaults>
</compile_context>

<pallas_src>
import math
import numpy as np

import jax
import jax.numpy as jnp
from jax import lax
from jax.experimental import pallas as pl
from jax.experimental.pallas import tpu as pltpu


def _make_qfilter_kernel(tol, num_filters, dim):
    F, D = num_filters, dim
    FD = F * D

    def kernel(x_ref, w_ref, o_ref):
        # x_ref : (D, TM)      flattened boxes for feature c (original f32 pixels)
        # w_ref : (2*F*D, D)   bf16; rows [0:FD] = Re(U_f) stacked, [FD:2FD] = Im(U_f)
        # o_ref : (F*D, TM)    bf16 masked measurement probabilities
        x = x_ref[...]                                              # (D, TM) f32
        norm2 = jnp.sum(x * x, axis=0, keepdims=True)               # (1, TM)
        # Guard subnormal norms: rsqrt of a denormal can overflow to inf and
        # inf * 0 (mask) would produce NaN.
        inv_norm = jnp.where(norm2 > 1e-30, lax.rsqrt(norm2), 0.0)
        psi = (x * inv_norm).astype(jnp.bfloat16)                   # amplitude states
        # One wide MXU matmul: Re and Im parts of all F filters at once.
        amp = jnp.dot(w_ref[...], psi,
                      preferred_element_type=jnp.float32)           # (2FD, TM) f32
        ar = amp[:FD, :]                                            # sublane-aligned
        ai = amp[FD:, :]
        probs = ar * ar + ai * ai                                   # (FD, TM) f32
        # Zero where the ORIGINAL f32 data < tol (same mask for all filters);
        # broadcast through a free (F, D, TM) view instead of a concat temporary.
        mask = (x >= tol).astype(jnp.float32)                       # (D, TM)
        tm = probs.shape[-1]
        masked = probs.reshape(F, D, tm) * mask[None, :, :]
        o_ref[...] = masked.reshape(FD, tm).astype(o_ref.dtype)

    return kernel


class QuantumLayer2D:
    """JAX/Pallas re-implementation of the torch-backend QuantumLayer2D forward."""

    def __init__(self, shape, num_filters=3, gates_name="G3", num_gates=300,
                 num_features=19, tol=1e-6, stride=2, seed=0,
                 out_dtype=jnp.bfloat16):
        assert shape[0] == shape[1], "square boxes only"
        self.n = int(shape[0])
        self.dim = self.n * self.n
        self.nqbits = int(math.log2(self.dim))
        self.num_filters = num_filters
        self.num_features = num_features
        self.tol = float(tol)
        self.gates_name = gates_name      # recorded; reservoir is synthesized below
        self.num_gates = num_gates
        self.out_dtype = out_dtype
        # TODO(synk): overlapping boxes (stride < box size) and the qiskit/shots
        # backend are not replicated; boxes here are non-overlapping (stride = n).
        self.stride = self.n

        # Deterministic synthetic reservoir unitaries: one Haar-style random
        # unitary per (filter, feature), built via QR of a complex Gaussian.
        # Stored pre-stacked per feature as W[c] = [Re(U_0..U_{F-1}); Im(...)]
        # of shape (2*F*D, D) so the kernel issues a SINGLE wide matmul.
        rng = np.random.default_rng(seed)
        D, F, C = self.dim, num_filters, num_features
        FD = F * D
        w = np.zeros((C, 2 * FD, D), np.float32)
        for f in range(F):
            for c in range(C):
                z = (rng.standard_normal((D, D))
                     + 1j * rng.standard_normal((D, D)))
                q, r = np.linalg.qr(z)
                d = np.diagonal(r)
                q = q * (d / np.abs(d))[None, :]
                w[c, f * D:(f + 1) * D, :] = np.real(q).astype(np.float32)
                w[c, FD + f * D:FD + (f + 1) * D, :] = np.imag(q).astype(np.float32)
        self._w_np = w                       # full-precision copy (reference check)
        self.w = jnp.asarray(w, dtype=jnp.bfloat16)   # MXU operand (bf16, f32 acc)

    # --- tile sizing: derive TM from an explicit VMEM budget --------------------
    def _pick_tm(self, M):
        D = self.dim
        FD = self.num_filters * D
        out_bytes = jnp.dtype(self.out_dtype).itemsize
        # Per box-column bytes: double-buffered x (f32) + out streams, plus the
        # dominant f32 in-kernel temporaries (amp ~2FD, probs ~FD, psi/x/mask ~3D).
        per_col = 2 * (4 * D + out_bytes * FD) + 4 * (3 * FD + 3 * D)
        budget = 20 * 1024 * 1024            # headroom even under v7x's 64 MiB VMEM
        tm = (budget // per_col) // 128 * 128
        tm = max(128, min(8192, tm))
        tm = min(tm, ((M + 127) // 128) * 128)   # never exceed (lane-padded) M
        return int(tm)

    def __call__(self, data):
        B, C, N, N2 = data.shape
        assert N == N2 and C == self.num_features and N % self.n == 0
        n, D, F = self.n, self.dim, self.num_filters
        FD = F * D
        nb = N // n
        M = B * nb * nb

        # (B, C, N, N) -> (C, D, M): non-overlapping n x n boxes per feature with
        # the (large) box index M as the LAST dim (lane-dense).
        # TODO(synk): these two HBM repacks (here and after the kernel) could be
        # fused into the kernel by gridding over (C, B, row-strips); left to XLA.
        x = data.astype(jnp.float32).reshape(B, C, nb, n, nb, n)
        x = jnp.transpose(x, (1, 3, 5, 0, 2, 4)).reshape(C, D, M)

        TM = self._pick_tm(M)
        Mp = ((M + TM - 1) // TM) * TM
        if Mp != M:
            x = jnp.pad(x, ((0, 0), (0, 0), (0, Mp - M)))
        Mt = Mp // TM

        out_bytes = jnp.dtype(self.out_dtype).itemsize
        cost = pl.CostEstimate(
            flops=4 * FD * D * Mp * C,                  # one (2FD,D)@(D,TM) matmul / tile
            transcendentals=C * Mp,                     # rsqrt per box
            bytes_accessed=(4 * C * D * Mp             # x in (f32)
                            + 2 * C * 2 * FD * D       # stacked weights (bf16)
                            + out_bytes * C * FD * Mp),  # out
        )

        out = pl.pallas_call(
            _make_qfilter_kernel(self.tol, F, D),
            out_shape=jax.ShapeDtypeStruct((C, FD, Mp), self.out_dtype),
            grid_spec=pltpu.PrefetchScalarGridSpec(
                num_scalar_prefetch=0,
                # M tiles lead: large/even axis is the megacore split axis on v7x
                # (C=19 would give a 10/9 core imbalance).  The per-step weight
                # re-DMA this implies is a few KB -> negligible.
                grid=(Mt, C),
                in_specs=[
                    pl.BlockSpec((None, D, TM), lambda m, c: (c, 0, m)),
                    pl.BlockSpec((None, 2 * FD, D), lambda m, c: (c, 0, 0)),
                ],
                out_specs=pl.BlockSpec((None, FD, TM), lambda m, c: (c, 0, m)),
            ),
            compiler_params=pltpu.CompilerParams(
                dimension_semantics=("parallel", "parallel"),
                vmem_limit_bytes=40 * 1024 * 1024),
            cost_estimate=cost,
        )(x, self.w)

        # (C, F*D, Mp) -> (B, F*C, N, N), filter-major channel order
        out = out[:, :, :M].reshape(C, F, n, n, B, nb, nb)
        out = jnp.transpose(out, (4, 1, 0, 5, 2, 6, 3)).reshape(B, F * C, N, N)
        return out


def _reference(layer, data):
    """Pure numpy reference (float64, full-precision weights) for correctness."""
    B, C, N, _ = data.shape
    n, D, F = layer.n, layer.dim, layer.num_filters
    FD = F * D
    nb = N // n
    x = np.asarray(data, np.float64).reshape(B, C, nb, n, nb, n)
    x = x.transpose(1, 0, 2, 4, 3, 5).reshape(C, B * nb * nb, D)   # (C, M, D)
    w = np.asarray(layer._w_np, np.float64)                        # (C, 2FD, D)
    norm = np.sqrt((x ** 2).sum(-1, keepdims=True))
    psi = np.where(norm > 0, x / np.maximum(norm, 1e-300), 0.0)
    M = x.shape[1]
    out = np.zeros((F, C, M, D))
    for c in range(C):
        for f in range(F):
            u = w[c, f * D:(f + 1) * D] + 1j * w[c, FD + f * D:FD + (f + 1) * D]
            amp = psi[c] @ u.T
            out[f, c] = (np.abs(amp) ** 2) * (x[c] >= layer.tol)
    out = out.reshape(F, C, B, nb, nb, n, n)
    out = out.transpose(2, 0, 1, 3, 5, 4, 6).reshape(B, F * C, N, N)
    return out


if __name__ == "__main__":
    key = jax.random.PRNGKey(0)
    B, C, N = 2, 4, 16
    x = jax.random.uniform(key, (B, C, N, N), dtype=jnp.float32)

    layer = QuantumLayer2D(shape=(4, 4), num_filters=3, gates_name="G3",
                           num_gates=300, num_features=C, tol=1e-6, stride=4)
    y = layer(x)
    y = jax.block_until_ready(y)

    assert y.shape == (B, layer.num_filters * C, N, N), y.shape
    y_np = np.asarray(jnp.asarray(y, jnp.float32))
    assert np.all(np.isfinite(y_np))
    assert np.all(y_np >= 0.0)
    ref = _reference(layer, np.asarray(x))
    err = float(np.max(np.abs(y_np - ref)))
    # bf16 weights / psi / output vs float64 reference: worst-case ~1e-2 abs.
    assert err < 2e-2, err
    print("KERNEL_OK")
</pallas_src>

<mosaic_0001>
module attributes {stable_mosaic.version = 11 : i64} {
  func.func @kernel(%arg0: i32, %arg1: i32, %arg2: memref<1x16x128xf32, #tpu.memory_space<vmem>>, %arg3: memref<1x96x16xbf16, #tpu.memory_space<vmem>>, %arg4: memref<1x48x128xbf16, #tpu.memory_space<vmem>>) attributes {dimension_semantics = [#tpu.dimension_semantics<parallel>, #tpu.dimension_semantics<parallel>], iteration_bounds = array<i64: 1, 4>, scalar_prefetch = 0 : i64, scratch_operands = 0 : i64, tpu.core_type = #tpu.core_type<tc>, window_params = [{transform_indices = @transform_0, window_bounds = array<i64: 1, 16, 128>}, {transform_indices = @transform_1, window_bounds = array<i64: 1, 96, 16>}, {transform_indices = @transform_2, window_bounds = array<i64: 1, 48, 128>}]} {
    %c0 = arith.constant 0 : index
    %c0_0 = arith.constant 0 : index
    %c0_1 = arith.constant 0 : index
    %0 = vector.load %arg2[%c0, %c0_0, %c0_1] : memref<1x16x128xf32, #tpu.memory_space<vmem>>, vector<1x16x128xf32>
    %1 = vector.shape_cast %0 : vector<1x16x128xf32> to vector<16x128xf32>
    %2 = arith.mulf %1, %1 : vector<16x128xf32>
    %cst = arith.constant dense<0.000000e+00> : vector<128xf32>
    %3 = vector.multi_reduction <add>, %2, %cst [0] : vector<16x128xf32> to vector<128xf32>
    %4 = vector.shape_cast %3 : vector<128xf32> to vector<1x128xf32>
    %cst_2 = arith.constant 1.000000e-30 : f32
    %5 = vector.broadcast %cst_2 : f32 to vector<1x128xf32>
    %6 = arith.cmpf ogt, %4, %5 : vector<1x128xf32>
    %7 = math.rsqrt %4 : vector<1x128xf32>
    %cst_3 = arith.constant 0.000000e+00 : f32
    %8 = vector.broadcast %cst_3 : f32 to vector<1x128xf32>
    %9 = arith.select %6, %7, %8 : vector<1x128xi1>, vector<1x128xf32>
    %10 = vector.broadcast %9 : vector<1x128xf32> to vector<16x128xf32>
    %11 = arith.mulf %1, %10 : vector<16x128xf32>
    %12 = arith.truncf %11 : vector<16x128xf32> to vector<16x128xbf16>
    %c0_4 = arith.constant 0 : index
    %c0_5 = arith.constant 0 : index
    %c0_6 = arith.constant 0 : index
    %13 = vector.load %arg3[%c0_4, %c0_5, %c0_6] : memref<1x96x16xbf16, #tpu.memory_space<vmem>>, vector<1x96x16xbf16>
    %14 = vector.shape_cast %13 : vector<1x96x16xbf16> to vector<96x16xbf16>
    %cst_7 = arith.constant dense<0.000000e+00> : vector<96x128xf32>
    %15 = tpu.matmul %14, %12, %cst_7 {dimension_numbers = #tpu.dot_dimension_numbers<[1], [0], [0], [1], [0, 0, 1, 1], [], []>} : vector<96x16xbf16>, vector<16x128xbf16>, vector<96x128xf32> -> vector<96x128xf32>
    %16 = vector.extract_strided_slice %15 {offsets = [0, 0], sizes = [48, 128], strides = [1, 1]} : vector<96x128xf32> to vector<48x128xf32>
    %17 = vector.extract_strided_slice %15 {offsets = [48, 0], sizes = [48, 128], strides = [1, 1]} : vector<96x128xf32> to vector<48x128xf32>
    %18 = arith.mulf %16, %16 : vector<48x128xf32>
    %19 = arith.mulf %17, %17 : vector<48x128xf32>
    %20 = arith.addf %18, %19 : vector<48x128xf32>
    %cst_8 = arith.constant 9.99999997E-7 : f32
    %21 = vector.broadcast %cst_8 : f32 to vector<16x128xf32>
    %22 = arith.cmpf oge, %1, %21 : vector<16x128xf32>
    %23 = arith.extui %22 : vector<16x128xi1> to vector<16x128xi32>
    %24 = arith.sitofp %23 : vector<16x128xi32> to vector<16x128xf32>
    %25 = vector.shape_cast %20 : vector<48x128xf32> to vector<3x16x128xf32>
    %26 = vector.shape_cast %24 : vector<16x128xf32> to vector<1x16x128xf32>
    %27 = vector.broadcast %26 : vector<1x16x128xf32> to vector<3x16x128xf32>
    %28 = arith.mulf %25, %27 : vector<3x16x128xf32>
    %29 = vector.shape_cast %28 : vector<3x16x128xf32> to vector<48x128xf32>
    %30 = arith.truncf %29 : vector<48x128xf32> to vector<48x128xbf16>
    %c0_9 = arith.constant 0 : index
    %c0_10 = arith.constant 0 : index
    %c0_11 = arith.constant 0 : index
    %31 = vector.load %arg4[%c0_9, %c0_10, %c0_11] : memref<1x48x128xbf16, #tpu.memory_space<vmem>>, vector<1x48x128xbf16>
    %32 = vector.shape_cast %31 : vector<1x48x128xbf16> to vector<48x128xbf16>
    %33 = vector.shape_cast %30 : vector<48x128xbf16> to vector<1x48x128xbf16>
    tpu.vector_store %arg4[%c0_9, %c0_10, %c0_11], %33 {strides = array<i32>} : memref<1x48x128xbf16, #tpu.memory_space<vmem>>, vector<1x48x128xbf16>,
    return
  }
  func.func @transform_0(%arg0: i32, %arg1: i32) -> (i32, i32, i32) {
    %c0_i32 = arith.constant 0 : i32
    %c0_i32_0 = arith.constant 0 : i32
    return %arg1, %c0_i32, %arg0 : i32, i32, i32
  }
  func.func @transform_1(%arg0: i32, %arg1: i32) -> (i32, i32, i32) {
    %c0_i32 = arith.constant 0 : i32
    %c0_i32_0 = arith.constant 0 : i32
    %c0_i32_1 = arith.constant 0 : i32
    return %arg1, %c0_i32, %c0_i32_0 : i32, i32, i32
  }
  func.func @transform_2(%arg0: i32, %arg1: i32) -> (i32, i32, i32) {
    %c0_i32 = arith.constant 0 : i32
    %c0_i32_0 = arith.constant 0 : i32
    return %arg1, %c0_i32, %arg0 : i32, i32, i32
  }
}

</mosaic_0001>

<bundles_post_ra>
// kernel: tpu_custom_call.1
= control target key start
LH: loop header
LB: loop body
LE: loop exit
PB: predicated region body
PF: predicated region fallthrough
CT: control target
= control target key end

     0   :  { %7 = vsyncpa [#allocation3], 0  ;;  %s814_s0 = inlined_call_operand.vmem [shape: f32[4,16,128], index: 0, kind: input, shape index: {}]   ;;  %s815_s1 = inlined_call_operand.vmem [shape: bf16[4,96,16], index: 1, kind: input, shape index: {}]   ;;  %s816_s2 = inlined_call_operand.hbm [shape: bf16[4,48,128], index: 2, kind: output, shape index: {}]  }
   0x1   :  { %9 = vsyncpa [#allocation3 + $0x1], 0  ;;  %s694_s9 = smov 0   ;;  %s696_s10 = smov 0  }
   0x2   :  { %s698_s11 = smov 0   ;;  %s700_s12 = smov 0  }
   0x3   :  { %s702_s13 = smov 0   ;;  %s704_s14 = smov 0  }
   0x4 LB: > { %s463_s15 = sadd.s32 4294967295, %s674_s14   ;;  %s464_s16 = sadd.s32 4294967294, %s674_s14   ;;  %s674_s14 = sphi %s704_s14, %s15_s14   ;;  %s670_s13 = sphi %s702_s13, %s823_s13   ;;  %s666_s12 = sphi %s700_s12, %s822_s12   ;;  %s662_s11 = sphi %s698_s11, %s821_s11   ;;  %s658_s10 = sphi %s696_s10, %s820_s10   ;;  %s654_s9 = sphi %s694_s9, %s819_s9  }
   0x5   : > { %s24_s17 = sadd.s32 1, %s670_s13  ;;  %s90_s18 = sadd.s32 1, %s662_s11 }
   0x6   : > { %p25_p0 = scmp.ge.s32.totalorder %s24_s17, 4  ;;  %p100_p1 = scmp.ne.s32.totalorder %s662_s11, %s658_s10 }
   0x7   : > { %p101_p2 = scmp.eq.s32.totalorder %s463_s15, 3  ;;  %p106_p3 = scmp.ne.s32.totalorder %s658_s10, %s654_s9 }
   0x8   : > { %s825_s17 = smov (%p25_p0, %s24_s17), 0  ;;  %p107_p5 = scmp.eq.s32.totalorder %s464_s16, 3 }
   0x9   : > { %p734_p4 = por %p101_p2, %p100_p1  ;;  %s85_s20 = ssub.s32 %s670_s13, %s825_s17 }
   0xa   : > { %p467_p6 = scmp.ge.s32.totalorder %s674_s14, 1  ;;  %p88_p7 = scmp.eq.s32.totalorder %s85_s20, 0 }
   0xb   : > { %p741_p8 = por %p107_p5, %p106_p3  ;;  %p144_p9 = scmp.lt.s32.totalorder %s674_s14, 5 }
   0xc   : > { %s747_s22 = scalar_select %p88_p7, %s662_s11, %s90_s18  }
   0xd   : > { %p145_p10 = pnand %p467_p6, %p144_p9 }
   0xe   : > { %p174_p11 = scmp.lt.s32.totalorder (!%p145_p10), %s666_s12, 3  ;;  %s171_s4 = sand.u32 (!%p145_p10), 1, %s658_s10  }
   0xf   : > { %148 = sbr.rel (%p145_p10) target bundleno = 235 (0xeb), region = 28  ;;  %s357_s20 = scalar_lea.sflag (!%p145_p10), [#allocation3], %s171_s4 }
  0x10   : > { %s533_s5 = smul.u32 (!%p145_p10), 24, %s171_s4 }
  0x11   : > { %s535_s7 = smul.u32 (!%p145_p10), 24, %s666_s12 }
  0x12   : > { %s173_s6 = scalar_lea.vmem (!%p145_p10), [#allocation2], %s533_s5 }
  0x13   : > { %s369_s16 = scalar_lea.hbm (!%p145_p10), %s816_s2, %s535_s7  ;;  %s370_s18 = sshll.u32 (!%p145_p10), %s173_s6, 4  ;;  %s371_s18 = int_to_ptr.vmem [resolvable:$true] %s370_s18 }
  0x14   : > { %s751_s23 = scalar_select %p174_p11, %s666_s12, 3  ;;  %vm256_vm4 = vcmask 130048   ;;  %v676_v40 = vmov 0.0  }
  0x15   : > { %s372_s12 = sshll.u32 %s369_s16, 4  ;;  %s373_s12 = int_to_ptr.hbm [resolvable:$true] %s372_s12 }
  0x16   : > { %s506_s24 = sshll.u32 %s751_s23, 4  ;;  %s534_s28 = smul.u32 48, %s751_s23 }
  0x17   : > { %s181_s27 = scalar_lea.vmem %s814_s0, %s506_s24  ;;  %s610_s23 = sshra.s32 %s373_s12, 4  ;;  %s611_s23 = int_to_ptr.hbm [resolvable:$true] %s610_s23 }
  0x18   : > { %v757_v0 = vld [vmem:[%s181_s27] sm:$0xff]  ;;  %v759_v1 = vld [vmem:[%s181_s27 + $0x8] sm:$0xff]  ;;  %s186_s3 = scalar_lea.vmem %s815_s1, %s534_s28  ;;  %s612_s24 = scalar_lea.hbm %s611_s23, 24 }
  0x19   : > { %v190_v2 = vmul.f32 %v757_v0, %v757_v0  ;;  %v191_v3 = vmul.f32 %v759_v1, %v759_v1  ;;  %v508_v22 = vld [vmem:[%s186_s3 + $0x8] sm:$0xff]  ;;  %v510_v23 = vld [vmem:[%s186_s3 + $0x18] sm:$0xff]  ;;  %v507_v24 = vld [vmem:[%s186_s3] sm:$0xff]  ;;  %vm332_vm5 = vcmp.ge.f32.partialorder %v757_v0, 1e-06  ;;  %p613_p12 = scmp.ne.s32.totalorder %s611_s23, %s612_s24  ;;  %s616_s27 = scalar_lea.hbm %s816_s2, 96 }
  0x1a   : > { %v512_v25 = vld [vmem:[%s186_s3 + $0x28] sm:$0xff]  ;;  %v509_v26 = vld [vmem:[%s186_s3 + $0x10] sm:$0xff]  ;;  %v511_v27 = vld [vmem:[%s186_s3 + $0x20] sm:$0xff]  ;;  %vm333_vm6 = vcmp.ge.f32.partialorder %v759_v1, 1e-06  ;;  %v501_v41 = vsel %vm332_vm5, 1.0, %v676_v40  ;;  %p617_p1 = scmp.lt.s32.totalorder %s611_s23, %s816_s2  ;;  %p618_p2 = scmp.lt.s32.totalorder %s616_s27, %s612_s24 }
  0x1b   : > { %v192_v4 = vadd.f32 %v191_v3, %v190_v2  ;;  %v502_v42 = vsel %vm333_vm6, 1.0, %v676_v40  ;;  %p614_p13 = pnand %p613_p12, %p734_p4 }
  0x1c   : > { %p619_p3 = por %p618_p2, %p617_p1 }
  0x1d   : > { %v193_v5 = vrot.slane %v192_v4, 4  ;;  %p615_p0 = pneg %p614_p13 }
  0x1f   : > { %v194_v6 = vadd.f32 %v193_v5, %v192_v4  ;;  %p620_p5 = pnand %p619_p3, %p615_p0 }
  0x21   : > { %v195_v7 = vrot.slane %v194_v6, 2 }
  0x23   : > { %v196_v8 = vadd.f32 %v195_v7, %v194_v6 }
  0x25   : > { %v197_v9 = vrot.slane %v196_v8, 1 }
  0x27   : > { %v198_v10 = vadd.f32 %v197_v9, %v196_v8 }
  0x29   : > { %594 = vrsqrt.f32 %v198_v10  ;;  %vm206_vm0 = vweird.f32 %v198_v10  ;;  %vm199_vm3 = vcmp.gt.f32.partialorder %v198_v10, 1e-30 }
  0x2f   : > { %v595_v11 = vpop.eup %594 }
  0x30   : > { %v201_v12 = vmul.f32 %v595_v11, %v198_v10  ;;  %vm207_vm1 = vweird.f32 %v595_v11 }
  0x31   : > { %vm208_vm2 = vmor %vm206_vm0, %vm207_vm1 }
  0x32   : > { %v202_v13 = vmul.f32 %v595_v11, %v201_v12 }
  0x34   : > { %v203_v14 = vmul.f32 0.5, %v202_v13 }
  0x36   : > { %v204_v15 = vsub.f32 1.5, %v203_v14 }
  0x38   : > { %v205_v16 = vmul.f32 %v595_v11, %v204_v15 }
  0x3a   : > { %v209_v17 = vsel %vm208_vm2, %v595_v11, %v205_v16 }
  0x3b   : > { %v210_v18 = vsel %vm199_vm3, %v209_v17, 0.0 }
  0x3c   : > { %v211_v19 = vmul.f32 %v210_v18, %v757_v0  ;;  %v212_v20 = vmul.f32 %v210_v18, %v759_v1 }
  0x3e   : > { %v213_v21 = vpack.c.bf16 %v212_v20, %v211_v19 }
  0x40   : > { %530 = vmatpush.bf16.msra.mxu1 %v213_v21  ;;  %531 = vmatpush.bf16.msra.mxu2 %v213_v21 }
  0x41   : > { %282 = vmatpush.bf16.msra.mxu0 %v213_v21  ;;  %532 = vmatpush.bf16.msra.mxu3 %v213_v21 }
  0x43   : > { %496 = vmatmul.msk.bf16.vlgmr.msra.gmra.mxu1 %vm256_vm4, %v508_v22  ;;  %498 = vmatmul.msk.bf16.vlgmr.msra.gmra.mxu2 %vm256_vm4, %v510_v23 }
  0x44   : > { %495 = vmatmul.msk.bf16.vlgmr.msra.gmra.mxu0 %vm256_vm4, %v507_v24  ;;  %500 = vmatmul.msk.bf16.vlgmr.msra.gmra.mxu3 %vm256_vm4, %v512_v25 }
  0x53   : > { %497 = vmatmul.msk.bf16.gmra.mxu1 %vm256_vm4, %v509_v26  ;;  %499 = vmatmul.msk.bf16.gmra.mxu2 %vm256_vm4, %v511_v27 }
  0xc0   : > { %v289_v28 = vpop.f32.mrf.mxu1 }
  0xc1   : > { %v284_v29 = vpop.f32.mrf.mxu0  ;;  %v316_v58 = vmul.f32 %v289_v28, %v289_v28 }
  0xc2   : > { %v314_v33 = vmul.f32 %v284_v29, %v284_v29 }
  0xc6   : > { %v299_v30 = vpop.f32.mrf.mxu2 }
  0xc7   : > { %v320_v34 = vmul.f32 %v299_v30, %v299_v30  ;;  %v309_v35 = vpop.f32.mrf.mxu3 }
  0xc8   : > { %v291_v31 = vpop.f32.mrf.mxu1  ;;  %v324_v48 = vmul.f32 %v309_v35, %v309_v35 }
  0xc9   : > { %v286_v32 = vpop.f32.mrf.mxu0  ;;  %v326_v38 = vadd.f32 %v320_v34, %v314_v33  ;;  %v317_v62 = vmul.f32 %v291_v31, %v291_v31 }
  0xca   : > { %v315_v36 = vmul.f32 %v286_v32, %v286_v32 }
  0xcb   : > { %v338_v45 = vmul.f32 %v501_v41, %v326_v38 }
  0xce   : > { %v301_v37 = vpop.f32.mrf.mxu2 }
  0xcf   : > { %v321_v39 = vmul.f32 %v301_v37, %v301_v37  ;;  %v311_v51 = vpop.f32.mrf.mxu3 }
  0xd0   : > { %v294_v43 = vpop.f32.mrf.mxu1  ;;  %v325_v54 = vmul.f32 %v311_v51, %v311_v51 }
  0xd1   : > { %v327_v44 = vadd.f32 %v321_v39, %v315_v36  ;;  %v318_v49 = vmul.f32 %v294_v43, %v294_v43 }
  0xd3   : > { %v339_v46 = vmul.f32 %v502_v42, %v327_v44  ;;  %v330_v53 = vadd.f32 %v324_v48, %v318_v49 }
  0xd5   : > { %v516_v47 = vpack.c.bf16 %v339_v46, %v338_v45  ;;  %v342_v59 = vmul.f32 %v501_v41, %v330_v53 }
  0xd6   : > { %v304_v50 = vpop.f32.mrf.mxu2 }
  0xd7   : > { %517 = vst [vmem:[%s173_s6] sm:$0xff] %v516_v47   ;;  %v322_v56 = vmul.f32 %v304_v50, %v304_v50 }
  0xd8   : > { %v296_v52 = vpop.f32.mrf.mxu1 }
  0xd9   : > { %v319_v55 = vmul.f32 %v296_v52, %v296_v52  ;;  %v328_v63 = vadd.f32 %v322_v56, %v316_v58 }
  0xdb   : > { %v331_v57 = vadd.f32 %v325_v54, %v319_v55  ;;  %v340_v3 = vmul.f32 %v501_v41, %v328_v63 }
  0xdd   : > { %v343_v60 = vmul.f32 %v502_v42, %v331_v57 }
  0xde   : > { %v306_v61 = vpop.f32.mrf.mxu2 }
  0xdf   : > { %v526_v0 = vpack.c.bf16 %v343_v60, %v342_v59  ;;  %v323_v1 = vmul.f32 %v306_v61, %v306_v61 }
  0xe1   : > { %529 = vst [vmem:[%s173_s6 + $0x10] sm:$0xff] %v526_v0   ;;  %v329_v2 = vadd.f32 %v323_v1, %v317_v62 }
  0xe3   : > { %v341_v4 = vmul.f32 %v502_v42, %v329_v2 }
  0xe5   : > { %v521_v5 = vpack.c.bf16 %v341_v4, %v340_v3 }
  0xe7   : > { %528 = vst [vmem:[%s173_s6 + $0x8] sm:$0xff] %v521_v5  }
  0xe8   : > { %623 = shalt.err (!%p620_p5)
}
  0xe9   : > { %s677_s30 = smov 64   ;;  %s678_s3 = smov 4  }
  0xea   : > { %536 = dma.vmem_to_hbm [thread:$0]  (%p734_p4), %s371_s18, 384, %s373_s12, %s357_s20, %s677_s30, %s677_s30, %s678_s3  }
  0xeb PF: > { %p542_p6 = scmp.ge.s32.totalorder %s674_s14, 2  ;;  %s387_s4 = sand.u32 1, %s654_s9  }
  0xec   : > { %s388_s5 = scalar_lea.sflag [#allocation3], %s387_s4 }
  0xed   : > { %p539_p7 = pnand %p542_p6, %p741_p8 }
  0xef   : > { %p540_p9 = pneg %p539_p7 }
  0xf1   : > { %649 = dma.done.wait (%p540_p9), %s388_s5, 384  }
  0xf2   : > { %651 = vsyncadd (%p540_p9), %s388_s5, 4294966912  ;;  %s15_s14 = sadd.s32 1, %s674_s14   ;;  %s819_s9 = smov %s658_s10 }
  0xf3   : > { %p12_p10 = scmp.ge.s32.totalorder %s15_s14, 6   ;;  %s820_s10 = smov %s662_s11 }
  0xf4   : > { %s821_s11 = smov %s747_s22  ;;  %s822_s12 = smov %s670_s13 }
  0xf5   : > { %s823_s13 = smov %s825_s17  ;;  %14 = sbr.rel (!%p12_p10) target bundleno = 4 (0x4), region = 66 }
  0xfa   :  { %394 = vsyncpa [#allocation3], 1 }
  0xfb   :  { %396 = vsyncpa [#allocation3 + $0x1], 1 }

</bundles_post_ra>
